<compile_context>
chip_gen: v6e
topology: v6e:2x2x1
jax: 0.10.0
libtpu: 0.0.40
codegen_flags: <defaults>
</compile_context>

<pallas_src>
import math

import jax
import jax.numpy as jnp
from jax import lax
from jax.experimental import pallas as pl
from jax.experimental.pallas import tpu as pltpu

_LANE = 128
_DEFAULT_TILE_BYTES = 1 << 20   # ~1 MiB per input per grid step


def _round_up(x: int, m: int) -> int:
    return ((x + m - 1) // m) * m


def _num_tensorcores() -> int:
    """Best-effort TensorCore count (2 on v7x, 1 on v5e/v6e); safe fallback 1."""
    try:
        info = pltpu.get_tpu_info()
    except Exception:
        return 1
    for name in ("num_cores", "core_count", "num_tensorcores", "tensorcore_count"):
        v = getattr(info, name, None)
        if isinstance(v, int) and 1 <= v <= 8:
            return v
    return 1


def _make_kernel(steps: int, r_blk: int, m_valid: int):
    """Kernel accumulating sum((yt-yp)^2) elementwise into a lane-dense slab."""

    def kernel(yt_ref, yp_ref, acc_ref):
        i = pl.program_id(1)
        bidx = pl.program_id(0) * steps + i      # logical (unclamped) block index

        @pl.when(i == 0)
        def _init():
            acc_ref[...] = jnp.zeros_like(acc_ref)

        block_end = (bidx + 1) * r_blk

        # Steady state: pure VPU loop, no masking, no XLU, no sqrt.
        @pl.when(block_end <= m_valid)
        def _interior():
            d = yt_ref[...].astype(jnp.float32) - yp_ref[...].astype(jnp.float32)
            acc_ref[...] += d * d

        # Boundary / fully-out-of-range block: zero rows past the valid extent.
        @pl.when(block_end > m_valid)
        def _boundary():
            d = yt_ref[...].astype(jnp.float32) - yp_ref[...].astype(jnp.float32)
            rows = lax.broadcasted_iota(jnp.int32, d.shape, 0)
            d = jnp.where(bidx * r_blk + rows < m_valid, d, 0.0)
            acc_ref[...] += d * d

    return kernel


def mcrmse_loss(y_true: jax.Array, y_pred: jax.Array, *,
                split: int | None = None,
                tile_bytes: int = _DEFAULT_TILE_BYTES) -> jax.Array:
    assert y_true.shape == y_pred.shape and y_true.ndim == 2
    n, c = y_true.shape
    if split is None:
        split = _num_tensorcores()
    split = max(1, int(split))

    # Lane-dense zero-copy view: flatten the contiguous (N, C) data and view it
    # as an (M, L) slab with L = lcm(C, 128) so N*C elements sit densely on the
    # 128-wide lane axis.  Lane l holds column (l % C).
    lane = math.lcm(c, _LANE)
    t = n * c
    yt = y_true.reshape(-1)
    yp = y_pred.reshape(-1)
    rem = (-t) % lane
    if rem:
        # Only when N*C is not a multiple of 128: pad the flat view by < lane
        # zeros (one extra copy; zeros contribute 0 and we divide by true N).
        yt = jnp.concatenate([yt, jnp.zeros((rem,), yt.dtype)])
        yp = jnp.concatenate([yp, jnp.zeros((rem,), yp.dtype)])
    m = (t + rem) // lane
    yt = yt.reshape(m, lane)
    yp = yp.reshape(m, lane)

    # ~tile_bytes per input per grid step, sublane-aligned.
    itemsize = jnp.dtype(y_true.dtype).itemsize
    target_rows = max(8, (tile_bytes // (lane * itemsize)) // 8 * 8)
    rows_per_split = -(-m // split)
    if rows_per_split >= target_rows:
        r_blk = target_rows
    elif split == 1:
        r_blk = m                                   # whole slab, single block
    else:
        r_blk = min(target_rows, max(8, _round_up(rows_per_split, 8)))
    num_blocks = -(-m // r_blk)
    steps = -(-num_blocks // split)

    if split == 1:
        in_map = lambda s, i: (i, 0)
    else:
        last = num_blocks - 1
        # Clamp so trailing grid points of the last split never DMA out of
        # bounds; their contribution is fully masked in-kernel anyway.
        in_map = lambda s, i: (jnp.minimum(s * steps + i, last), 0)

    partial = pl.pallas_call(
        _make_kernel(steps, r_blk, m),
        out_shape=jax.ShapeDtypeStruct((split, r_blk, lane), jnp.float32),
        grid=(split, steps),
        in_specs=[
            pl.BlockSpec((r_blk, lane), in_map),
            pl.BlockSpec((r_blk, lane), in_map),
        ],
        out_specs=pl.BlockSpec((None, r_blk, lane), lambda s, i: (s, 0, 0)),
        compiler_params=pltpu.CompilerParams(
            dimension_semantics=("parallel", "arbitrary"),
        ),
        cost_estimate=pl.CostEstimate(
            flops=3 * t,
            transcendentals=0,
            bytes_accessed=2 * t * itemsize + split * r_blk * lane * 4,
        ),
    )(yt, yp)

    # Tiny epilogue in plain XLA: collapse split/rows, group lanes by column
    # (lane % C), divide by true N, sqrt per column, mean over columns.
    col_sumsq = partial.sum(axis=(0, 1)).reshape(lane // c, c).sum(axis=0)
    colwise_mse = col_sumsq / jnp.float32(n)
    return jnp.mean(jnp.sqrt(colwise_mse))


def _mcrmse_ref(y_true, y_pred):
    d = y_true.astype(jnp.float32) - y_pred.astype(jnp.float32)
    colwise_mse = jnp.mean(jnp.square(d), axis=0)
    return jnp.mean(jnp.sqrt(colwise_mse), axis=0)


if __name__ == "__main__":
    key = jax.random.PRNGKey(0)
    ks = jax.random.split(key, 8)

    # Case 1: small even shapes (batch=16, num_targets=8) — zero-copy path.
    yt = jax.random.normal(ks[0], (16, 8), jnp.float32)
    yp = jax.random.normal(ks[1], (16, 8), jnp.float32)
    out = mcrmse_loss(yt, yp)
    jax.block_until_ready(out)
    exp = _mcrmse_ref(yt, yp)
    assert jnp.allclose(out, exp, rtol=1e-5, atol=1e-5), (out, exp)

    # Case 2: C=6 and N*C not a multiple of 128 — exercises the small flat-pad
    # fallback and the lane%C epilogue grouping.
    yt = jax.random.normal(ks[2], (200, 6), jnp.float32)
    yp = jax.random.normal(ks[3], (200, 6), jnp.float32)
    out = mcrmse_loss(yt, yp)
    jax.block_until_ready(out)
    exp = _mcrmse_ref(yt, yp)
    assert jnp.allclose(out, exp, rtol=1e-5, atol=1e-5), (out, exp)

    # Case 3: multi-step reduction with a masked partial last block
    # (tiny tile_bytes forces several grid steps).
    yt = jax.random.normal(ks[4], (300, 8), jnp.float32)
    yp = jax.random.normal(ks[5], (300, 8), jnp.float32)
    out = mcrmse_loss(yt, yp, split=1, tile_bytes=4096)
    jax.block_until_ready(out)
    exp = _mcrmse_ref(yt, yp)
    assert jnp.allclose(out, exp, rtol=1e-5, atol=1e-5), (out, exp)

    # Case 4: explicit split=2 ('parallel' axis, as used on v7x), including a
    # clamped fully-out-of-range trailing block that must contribute zero.
    yt = jax.random.normal(ks[6], (320, 8), jnp.float32)
    yp = jax.random.normal(ks[7], (320, 8), jnp.float32)
    out = mcrmse_loss(yt, yp, split=2, tile_bytes=4096)
    jax.block_until_ready(out)
    exp = _mcrmse_ref(yt, yp)
    assert jnp.allclose(out, exp, rtol=1e-5, atol=1e-5), (out, exp)

    print("KERNEL_OK")
</pallas_src>

<mosaic_0001>
module attributes {stable_mosaic.version = 11 : i64} {
  func.func @kernel(%arg0: i32, %arg1: i32, %arg2: memref<1x128xf32, #tpu.memory_space<vmem>>, %arg3: memref<1x128xf32, #tpu.memory_space<vmem>>, %arg4: memref<1x1x128xf32, #tpu.memory_space<vmem>>) attributes {dimension_semantics = [#tpu.dimension_semantics<parallel>, #tpu.dimension_semantics<arbitrary>], iteration_bounds = array<i64: 1, 1>, scalar_prefetch = 0 : i64, scratch_operands = 0 : i64, tpu.core_type = #tpu.core_type<tc>, window_params = [{transform_indices = @transform_0, window_bounds = array<i64: 1, 128>}, {transform_indices = @transform_1, window_bounds = array<i64: 1, 128>}, {transform_indices = @transform_2, window_bounds = array<i64: 1, 1, 128>}]} {
    %c1_i32 = arith.constant 1 : i32
    %0 = arith.muli %arg0, %c1_i32 : i32
    %1 = arith.addi %0, %arg1 : i32
    %c0_i32 = arith.constant 0 : i32
    %2 = arith.cmpi eq, %arg1, %c0_i32 : i32
    %3 = arith.extui %2 : i1 to i32
    %c0_i32_0 = arith.constant 0 : i32
    %4 = arith.cmpi ne, %3, %c0_i32_0 : i32
    scf.if %4 {
      %cst = arith.constant 0.000000e+00 : f32
      %13 = vector.broadcast %cst : f32 to vector<1x128xf32>
      %c0 = arith.constant 0 : index
      %c0_7 = arith.constant 0 : index
      %c0_8 = arith.constant 0 : index
      %14 = vector.load %arg4[%c0, %c0_7, %c0_8] : memref<1x1x128xf32, #tpu.memory_space<vmem>>, vector<1x1x128xf32>
      %15 = vector.shape_cast %14 : vector<1x1x128xf32> to vector<1x128xf32>
      %16 = vector.shape_cast %13 : vector<1x128xf32> to vector<1x1x128xf32>
      tpu.vector_store %arg4[%c0, %c0_7, %c0_8], %16 {strides = array<i32>} : memref<1x1x128xf32, #tpu.memory_space<vmem>>, vector<1x1x128xf32>,
    } else {
    }
    %c1_i32_1 = arith.constant 1 : i32
    %5 = arith.addi %1, %c1_i32_1 : i32
    %c1_i32_2 = arith.constant 1 : i32
    %6 = arith.muli %5, %c1_i32_2 : i32
    %c1_i32_3 = arith.constant 1 : i32
    %7 = arith.cmpi sle, %6, %c1_i32_3 : i32
    %8 = arith.extui %7 : i1 to i32
    %c0_i32_4 = arith.constant 0 : i32
    %9 = arith.cmpi ne, %8, %c0_i32_4 : i32
    scf.if %9 {
      %c0 = arith.constant 0 : index
      %c0_7 = arith.constant 0 : index
      %13 = vector.load %arg2[%c0, %c0_7] : memref<1x128xf32, #tpu.memory_space<vmem>>, vector<1x128xf32>
      %c0_8 = arith.constant 0 : index
      %c0_9 = arith.constant 0 : index
      %14 = vector.load %arg3[%c0_8, %c0_9] : memref<1x128xf32, #tpu.memory_space<vmem>>, vector<1x128xf32>
      %15 = arith.subf %13, %14 : vector<1x128xf32>
      %c0_10 = arith.constant 0 : index
      %c0_11 = arith.constant 0 : index
      %c0_12 = arith.constant 0 : index
      %16 = vector.load %arg4[%c0_10, %c0_11, %c0_12] : memref<1x1x128xf32, #tpu.memory_space<vmem>>, vector<1x1x128xf32>
      %17 = vector.shape_cast %16 : vector<1x1x128xf32> to vector<1x128xf32>
      %18 = arith.mulf %15, %15 : vector<1x128xf32>
      %19 = arith.addf %17, %18 : vector<1x128xf32>
      %c0_13 = arith.constant 0 : index
      %c0_14 = arith.constant 0 : index
      %c0_15 = arith.constant 0 : index
      %20 = vector.load %arg4[%c0_13, %c0_14, %c0_15] : memref<1x1x128xf32, #tpu.memory_space<vmem>>, vector<1x1x128xf32>
      %21 = vector.shape_cast %20 : vector<1x1x128xf32> to vector<1x128xf32>
      %22 = vector.shape_cast %19 : vector<1x128xf32> to vector<1x1x128xf32>
      tpu.vector_store %arg4[%c0_13, %c0_14, %c0_15], %22 {strides = array<i32>} : memref<1x1x128xf32, #tpu.memory_space<vmem>>, vector<1x1x128xf32>,
    } else {
    }
    %c1_i32_5 = arith.constant 1 : i32
    %10 = arith.cmpi sgt, %6, %c1_i32_5 : i32
    %11 = arith.extui %10 : i1 to i32
    %c0_i32_6 = arith.constant 0 : i32
    %12 = arith.cmpi ne, %11, %c0_i32_6 : i32
    scf.if %12 {
      %c0 = arith.constant 0 : index
      %c0_7 = arith.constant 0 : index
      %13 = vector.load %arg2[%c0, %c0_7] : memref<1x128xf32, #tpu.memory_space<vmem>>, vector<1x128xf32>
      %c0_8 = arith.constant 0 : index
      %c0_9 = arith.constant 0 : index
      %14 = vector.load %arg3[%c0_8, %c0_9] : memref<1x128xf32, #tpu.memory_space<vmem>>, vector<1x128xf32>
      %15 = arith.subf %13, %14 : vector<1x128xf32>
      %16 = tpu.iota {dimensions = array<i32: 0>} : vector<1x128xi32>
      %c1_i32_10 = arith.constant 1 : i32
      %17 = arith.muli %1, %c1_i32_10 : i32
      %18 = vector.broadcast %17 : i32 to vector<1x128xi32>
      %19 = arith.addi %18, %16 : vector<1x128xi32>
      %c1_i32_11 = arith.constant 1 : i32
      %20 = vector.broadcast %c1_i32_11 : i32 to vector<1x128xi32>
      %21 = arith.cmpi slt, %19, %20 : vector<1x128xi32>
      %cst = arith.constant 0.000000e+00 : f32
      %22 = vector.broadcast %cst : f32 to vector<1x128xf32>
      %23 = arith.select %21, %15, %22 : vector<1x128xi1>, vector<1x128xf32>
      %c0_12 = arith.constant 0 : index
      %c0_13 = arith.constant 0 : index
      %c0_14 = arith.constant 0 : index
      %24 = vector.load %arg4[%c0_12, %c0_13, %c0_14] : memref<1x1x128xf32, #tpu.memory_space<vmem>>, vector<1x1x128xf32>
      %25 = vector.shape_cast %24 : vector<1x1x128xf32> to vector<1x128xf32>
      %26 = arith.mulf %23, %23 : vector<1x128xf32>
      %27 = arith.addf %25, %26 : vector<1x128xf32>
      %c0_15 = arith.constant 0 : index
      %c0_16 = arith.constant 0 : index
      %c0_17 = arith.constant 0 : index
      %28 = vector.load %arg4[%c0_15, %c0_16, %c0_17] : memref<1x1x128xf32, #tpu.memory_space<vmem>>, vector<1x1x128xf32>
      %29 = vector.shape_cast %28 : vector<1x1x128xf32> to vector<1x128xf32>
      %30 = vector.shape_cast %27 : vector<1x128xf32> to vector<1x1x128xf32>
      tpu.vector_store %arg4[%c0_15, %c0_16, %c0_17], %30 {strides = array<i32>} : memref<1x1x128xf32, #tpu.memory_space<vmem>>, vector<1x1x128xf32>,
    } else {
    }
    return
  }
  func.func @transform_0(%arg0: i32, %arg1: i32) -> (i32, i32) {
    %c0_i32 = arith.constant 0 : i32
    %c0_i32_0 = arith.constant 0 : i32
    return %arg1, %c0_i32 : i32, i32
  }
  func.func @transform_1(%arg0: i32, %arg1: i32) -> (i32, i32) {
    %c0_i32 = arith.constant 0 : i32
    %c0_i32_0 = arith.constant 0 : i32
    return %arg1, %c0_i32 : i32, i32
  }
  func.func @transform_2(%arg0: i32, %arg1: i32) -> (i32, i32, i32) {
    %c0_i32 = arith.constant 0 : i32
    %c0_i32_0 = arith.constant 0 : i32
    %c0_i32_1 = arith.constant 0 : i32
    return %arg0, %c0_i32, %c0_i32_0 : i32, i32, i32
  }
}

</mosaic_0001>

<bundles_post_ra>
// kernel: tpu_custom_call.1
= control target key start
LH: loop header
LB: loop body
LE: loop exit
PB: predicated region body
PF: predicated region fallthrough
CT: control target
= control target key end

     0   :  { %7 = vsyncpa [#allocation3], 0  ;;  %s148_s0 = inlined_call_operand.hbm [shape: f32[1,128], index: 0, kind: input, shape index: {}]   ;;  %s149_s1 = inlined_call_operand.vmem [shape: f32[1,128], index: 1, kind: input, shape index: {}]   ;;  %s150_s2 = inlined_call_operand.hbm [shape: f32[1,1,128], index: 2, kind: output, shape index: {}]  }
   0x1   :  { %8 = vsyncpa [#allocation4], 0  ;;  %s121_s9 = smov [#allocation2]  }
   0x2   :  { %s15_s10 = sshll.u32 %s121_s9, 4  ;;  %s16_s10 = int_to_ptr.vmem [resolvable:$true] %s15_s10 }
   0x3   :  { %s85_s11 = scalar_lea.vmem %s16_s10, 16  ;;  %s89_s12 = scalar_lea.vmem %s16_s10, 32 }
   0x4   :  { %p86_p0 = scmp.ne.s32.totalorder %s16_s10, %s85_s11  ;;  %p90_p1 = scmp.lt.s32.totalorder %s16_s10, %s16_s10 }
   0x5   :  { %p91_p2 = scmp.lt.s32.totalorder %s89_s12, %s85_s11 }
   0x7   :  { %p92_p3 = por %p91_p2, %p90_p1 }
   0x9   :  { %p93_p4 = pnand %p92_p3, %p86_p0 }
   0xb   :  { %96 = shalt.err (!%p93_p4)
}
   0xc   :  { %18 = dma.hbm_to_vmem [thread:$0]  %s148_s0, 16, %s16_s10, [#allocation3]  }
   0xd   :  { %117 = dma.done.wait [#allocation3], 16  }
   0xe   :  { %118 = vsyncadd [#allocation3], 4294967280  ;;  %v122_v0 = vmov 0.0   ;;  %v35_v1 = vld [vmem:[#allocation2] sm:$0x1]  ;;  %s123_s17 = smov [#allocation5]  }
   0xf   :  { %29 = vst [vmem:[#allocation5] sm:$0x1] %v122_v0  ;;  %v36_v2 = vld [vmem:[%s149_s1] sm:$0x1]  ;;  %s65_s18 = sshll.u32 %s123_s17, 4  ;;  %s66_s18 = int_to_ptr.vmem [resolvable:$true] %s65_s18 }
  0x10   :  { %v37_v3 = vsub.f32 %v35_v1, %v36_v2  ;;  %s97_s19 = scalar_lea.vmem %s66_s18, 16  ;;  %s101_s0 = scalar_lea.vmem %s66_s18, 32 }
  0x11   :  { %p98_p5 = scmp.ne.s32.totalorder %s66_s18, %s97_s19  ;;  %p102_p6 = scmp.lt.s32.totalorder %s66_s18, %s66_s18 }
  0x12   :  { %v39_v5 = vmul.f32 %v37_v3, %v37_v3  ;;  %p103_p7 = scmp.lt.s32.totalorder %s101_s0, %s97_s19 }
  0x14   :  { %p104_p8 = por %p103_p7, %p102_p6 }
  0x16   :  { %v38_v4 = vld [vmem:[#allocation5] sm:$0x1]  ;;  %p105_p9 = pnand %p104_p8, %p98_p5 }
  0x17   :  { %v40_v6 = vadd.f32 %v39_v5, %v38_v4 }
  0x19   :  { %41 = vst [vmem:[#allocation5] sm:$0x1] %v40_v6 }
  0x1a   :  { %108 = shalt.err (!%p105_p9)
}
  0x1b   :  { %68 = dma.vmem_to_hbm [thread:$0]  %s66_s18, 16, %s150_s2, [#allocation4]  }
  0x1c   :  { %119 = dma.done.wait [#allocation4], 16  }
  0x1d   :  { %120 = vsyncadd [#allocation4], 4294967280 }
  0x1e   :  { %72 = vsyncpa [#allocation3], 1 }
  0x1f   :  { %73 = vsyncpa [#allocation4], 1 }

</bundles_post_ra>
